<compile_context>
chip_gen: v5e
topology: v5e:2x2
jax: 0.10.0
libtpu: 0.0.40
codegen_flags: <defaults>
</compile_context>

<pallas_src>
import jax
import jax.numpy as jnp
from jax.experimental import pallas as pl
from jax.experimental.pallas import tpu as pltpu

_INV_SQRT2 = 0.7071067811865476
_LN_EPS = 1e-12


def _round_up(n, m):
    return ((n + m - 1) // m) * m


def _erf_f32(z):
    # Abramowitz & Stegun 7.1.26 approximation (max abs err ~1.5e-7) — only
    # abs/div/exp/where, all VPU/EUP-supported, guaranteed Mosaic lowering.
    # (Exact divide kept instead of approx reciprocal to stay within the 1e-4
    #  validation tolerance; the divide is negligible next to the matmuls.)
    a1, a2, a3, a4, a5 = (0.254829592, -0.284496736, 1.421413741,
                          -1.453152027, 1.061405429)
    p = 0.3275911
    az = jnp.abs(z)
    t = 1.0 / (1.0 + p * az)
    poly = ((((a5 * t + a4) * t + a3) * t + a2) * t + a1) * t
    e = 1.0 - poly * jnp.exp(-az * az)
    return jnp.where(z < 0.0, -e, e)


def _gelu_erf(x):
    # Matches the module's gelu: x * 0.5 * (1 + erf(x / sqrt(2)))
    return x * 0.5 * (1.0 + _erf_f32(x * _INV_SQRT2))


def text_encoder_kernel(x_ref, w1t_ref, b1_ref, w2t_ref, b2_ref, g_ref, bt_ref,
                        o_ref, acc_ref):
    # x_ref  : (TM, H)   resident across the I axis
    # w1t_ref: (H, TI)   chunk of Linear(H->I) weight, pre-transposed to [in, out]
    # b1_ref : (1, TI)
    # w2t_ref: (TI, H)   chunk of Linear(I->H) weight, pre-transposed to [in, out]
    # b2_ref/g_ref/bt_ref: (1, H)
    # o_ref  : (TM, H)
    # acc_ref: (TM, H) f32 scratch — accumulates the second matmul over I tiles
    i = pl.program_id(1)

    @pl.when(i == 0)
    def _():
        acc_ref[...] = jnp.zeros_like(acc_ref)

    # First linear: (TM,H) @ (H,TI) -> (TM,TI). Native-dtype MXU operands
    # (no f32 upcast), f32 accumulation via preferred_element_type.
    h = jnp.dot(x_ref[...], w1t_ref[...], preferred_element_type=jnp.float32)
    h = _gelu_erf(h + b1_ref[...].astype(jnp.float32))

    # Second linear: (TM,TI) @ (TI,H) -> (TM,H), accumulated over I tiles.
    acc_ref[...] += jnp.dot(h.astype(w2t_ref.dtype), w2t_ref[...],
                            preferred_element_type=jnp.float32)

    @pl.when(i == pl.num_programs(1) - 1)
    def _():
        # bias + residual + LayerNorm(eps=1e-12), all in f32.
        y = (acc_ref[...] + b2_ref[...].astype(jnp.float32)
             + x_ref[...].astype(jnp.float32))
        u = jnp.mean(y, axis=-1, keepdims=True)
        d = y - u
        var = jnp.mean(d * d, axis=-1, keepdims=True)
        inv = jax.lax.rsqrt(var + _LN_EPS)
        o_ref[...] = (g_ref[...].astype(jnp.float32) * (d * inv)
                      + bt_ref[...].astype(jnp.float32)).astype(o_ref.dtype)


def _vmem_need_bytes(tm, ti, H, x_bytes, w_bytes):
    dbl = 2  # default double-buffering of every BlockSpec operand
    return (dbl * tm * H * x_bytes        # x tile
            + dbl * H * ti * w_bytes      # W1^T tile
            + dbl * ti * 4                # b1 tile
            + dbl * ti * H * w_bytes      # W2^T tile
            + dbl * 3 * H * 4             # b2 / gamma / beta
            + dbl * tm * H * x_bytes      # output tile
            + tm * H * 4)                 # f32 accumulator scratch


def text_encoder_forward(x, w1, b1, w2, b2, ln_w, ln_b, *, tm=256, ti=1024):
    """x: [B, S, H]; w1: [I, H]; b1: [I]; w2: [H, I]; b2, ln_w, ln_b: [H]."""
    B, S, H = x.shape
    I = w1.shape[0]
    M = B * S

    xb = jnp.dtype(x.dtype).itemsize
    wb = jnp.dtype(w1.dtype).itemsize

    # Clamp tiles to the (padded) problem size; keep MXU/layout-friendly multiples.
    tm_eff = min(tm, _round_up(M, 8))
    ti_eff = min(ti, _round_up(I, 128))

    # Weight residency: if spanning the whole intermediate axis keeps the
    # double-buffered working set under a conservative, v7x-safe budget, the
    # weight block index becomes constant across the grid and Pallas fetches
    # W1/W2 from HBM exactly once.
    ti_full = _round_up(I, 128)
    if _vmem_need_bytes(tm_eff, ti_full, H, xb, wb) <= (56 << 20):
        ti_eff = ti_full

    M_pad = _round_up(M, tm_eff)
    I_pad = _round_up(I, ti_eff)

    xf = x.reshape(M, H)                    # glue: fold (B, S) into the row axis
    if M_pad != M:
        xf = jnp.pad(xf, ((0, M_pad - M), (0, 0)))

    # One-time weight prep (outside the kernel): transpose to [in, out] so both
    # in-kernel matmuls contract over RHS dim 0 (no per-step weight transposes),
    # and zero-pad the intermediate axis so padded I chunks contribute nothing.
    w1t = jnp.transpose(w1)                 # (H, I)
    w2t = jnp.transpose(w2)                 # (I, H)
    if I_pad != I:
        w1t = jnp.pad(w1t, ((0, 0), (0, I_pad - I)))
        w2t = jnp.pad(w2t, ((0, I_pad - I), (0, 0)))
        b1 = jnp.pad(b1, (0, I_pad - I))

    b1_2 = b1.reshape(1, I_pad)
    b2_2 = b2.reshape(1, H)
    g_2 = ln_w.reshape(1, H)
    bt_2 = ln_b.reshape(1, H)

    # (On v7x, an even number of m-tiles >= 2 lets "parallel" shard across
    #  both TensorCores; with real M = batch*seq this holds for free.)
    grid = (M_pad // tm_eff, I_pad // ti_eff)

    need = _vmem_need_bytes(tm_eff, ti_eff, H, xb, wb)
    vmem_limit = int(min(max(need * 5 // 4 + (2 << 20), 32 << 20), 100 << 20))

    out = pl.pallas_call(
        text_encoder_kernel,
        out_shape=jax.ShapeDtypeStruct((M_pad, H), x.dtype),
        grid=grid,
        in_specs=[
            pl.BlockSpec((tm_eff, H), lambda m, i: (m, 0)),   # x rows (resident over i)
            pl.BlockSpec((H, ti_eff), lambda m, i: (0, i)),   # W1^T chunk
            pl.BlockSpec((1, ti_eff), lambda m, i: (0, i)),   # b1 chunk
            pl.BlockSpec((ti_eff, H), lambda m, i: (i, 0)),   # W2^T chunk
            pl.BlockSpec((1, H), lambda m, i: (0, 0)),        # b2
            pl.BlockSpec((1, H), lambda m, i: (0, 0)),        # LayerNorm gamma
            pl.BlockSpec((1, H), lambda m, i: (0, 0)),        # LayerNorm beta
        ],
        out_specs=pl.BlockSpec((tm_eff, H), lambda m, i: (m, 0)),
        scratch_shapes=[pltpu.VMEM((tm_eff, H), jnp.float32)],
        compiler_params=pltpu.CompilerParams(
            dimension_semantics=("parallel", "arbitrary"),
            vmem_limit_bytes=vmem_limit),
    )(xf, w1t, b1_2, w2t, b2_2, g_2, bt_2)

    if M_pad != M:
        out = out[:M]
    return out.reshape(B, S, H)


def _reference(x, w1, b1, w2, b2, ln_w, ln_b, eps=_LN_EPS):
    hp = jax.lax.Precision.HIGHEST
    h = jnp.einsum("bsh,ih->bsi", x, w1, precision=hp) + b1
    h = h * 0.5 * (1.0 + jax.scipy.special.erf(h * _INV_SQRT2))
    y = jnp.einsum("bsi,hi->bsh", h, w2, precision=hp) + b2
    y = y + x
    u = y.mean(-1, keepdims=True)
    s = ((y - u) ** 2).mean(-1, keepdims=True)
    yn = (y - u) / jnp.sqrt(s + eps)
    return ln_w * yn + ln_b


if __name__ == "__main__":
    # Small shapes consistent with the module: batch=2, seq=8, hidden=32,
    # intermediate=256 (scaled-down BERT 768/3072).
    B, S, H, I = 2, 8, 32, 256

    key = jax.random.PRNGKey(0)
    kx, k1, k2, k3, k4, k5, k6 = jax.random.split(key, 7)

    x = jax.random.normal(kx, (B, S, H), dtype=jnp.float32)
    w1 = jax.random.normal(k1, (I, H), dtype=jnp.float32) * 0.02   # Linear(H -> I)
    b1 = jax.random.normal(k2, (I,), dtype=jnp.float32) * 0.02
    w2 = jax.random.normal(k3, (H, I), dtype=jnp.float32) * 0.02   # Linear(I -> H)
    b2 = jax.random.normal(k4, (H,), dtype=jnp.float32) * 0.02
    ln_w = 1.0 + 0.1 * jax.random.normal(k5, (H,), dtype=jnp.float32)
    ln_b = 0.1 * jax.random.normal(k6, (H,), dtype=jnp.float32)

    out = text_encoder_forward(x, w1, b1, w2, b2, ln_w, ln_b)
    out = jax.block_until_ready(out)

    ref = _reference(x, w1, b1, w2, b2, ln_w, ln_b)
    assert out.shape == (B, S, H)
    assert jnp.allclose(out, ref, atol=1e-4, rtol=1e-4), (
        float(jnp.max(jnp.abs(out - ref))))

    print("KERNEL_OK")
</pallas_src>

<mosaic_0001>
module attributes {stable_mosaic.version = 11 : i64} {
  func.func @text_encoder_kernel(%arg0: i32, %arg1: i32, %arg2: memref<16x32xf32, #tpu.memory_space<vmem>>, %arg3: memref<32x256xf32, #tpu.memory_space<vmem>>, %arg4: memref<1x256xf32, #tpu.memory_space<vmem>>, %arg5: memref<256x32xf32, #tpu.memory_space<vmem>>, %arg6: memref<1x32xf32, #tpu.memory_space<vmem>>, %arg7: memref<1x32xf32, #tpu.memory_space<vmem>>, %arg8: memref<1x32xf32, #tpu.memory_space<vmem>>, %arg9: memref<16x32xf32, #tpu.memory_space<vmem>>, %arg10: memref<16x32xf32, #tpu.memory_space<vmem>>) attributes {dimension_semantics = [#tpu.dimension_semantics<parallel>, #tpu.dimension_semantics<arbitrary>], iteration_bounds = array<i64: 1, 1>, scalar_prefetch = 0 : i64, scratch_operands = 1 : i64, tpu.core_type = #tpu.core_type<tc>, window_params = [{transform_indices = @transform_0, window_bounds = array<i64: 16, 32>}, {transform_indices = @transform_1, window_bounds = array<i64: 32, 256>}, {transform_indices = @transform_2, window_bounds = array<i64: 1, 256>}, {transform_indices = @transform_3, window_bounds = array<i64: 256, 32>}, {pipeline_mode = #tpu.pipeline_mode<synchronous>, transform_indices = @transform_4, window_bounds = array<i64: 1, 32>}, {pipeline_mode = #tpu.pipeline_mode<synchronous>, transform_indices = @transform_5, window_bounds = array<i64: 1, 32>}, {pipeline_mode = #tpu.pipeline_mode<synchronous>, transform_indices = @transform_6, window_bounds = array<i64: 1, 32>}, {transform_indices = @transform_7, window_bounds = array<i64: 16, 32>}]} {
    %c0_i32 = arith.constant 0 : i32
    %0 = arith.cmpi eq, %arg1, %c0_i32 : i32
    %1 = arith.extui %0 : i1 to i32
    %c0_i32_0 = arith.constant 0 : i32
    %2 = arith.cmpi ne, %1, %c0_i32_0 : i32
    scf.if %2 {
      %cst_30 = arith.constant 0.000000e+00 : f32
      %57 = vector.broadcast %cst_30 : f32 to vector<16x32xf32>
      %c0_31 = arith.constant 0 : index
      %c0_32 = arith.constant 0 : index
      %58 = vector.load %arg10[%c0_31, %c0_32] : memref<16x32xf32, #tpu.memory_space<vmem>>, vector<16x32xf32>
      tpu.vector_store %arg10[%c0_31, %c0_32], %57 {strides = array<i32>} : memref<16x32xf32, #tpu.memory_space<vmem>>, vector<16x32xf32>,
    } else {
    }
    %c0 = arith.constant 0 : index
    %c0_1 = arith.constant 0 : index
    %3 = vector.load %arg2[%c0, %c0_1] : memref<16x32xf32, #tpu.memory_space<vmem>>, vector<16x32xf32>
    %c0_2 = arith.constant 0 : index
    %c0_3 = arith.constant 0 : index
    %4 = vector.load %arg3[%c0_2, %c0_3] : memref<32x256xf32, #tpu.memory_space<vmem>>, vector<32x256xf32>
    %cst = arith.constant dense<0.000000e+00> : vector<16x256xf32>
    %5 = tpu.matmul %3, %4, %cst {dimension_numbers = #tpu.dot_dimension_numbers<[1], [0], [0], [1], [0, 0, 1, 1], [], []>} : vector<16x32xf32>, vector<32x256xf32>, vector<16x256xf32> -> vector<16x256xf32>
    %c0_4 = arith.constant 0 : index
    %c0_5 = arith.constant 0 : index
    %6 = vector.load %arg4[%c0_4, %c0_5] : memref<1x256xf32, #tpu.memory_space<vmem>>, vector<1x256xf32>
    %7 = vector.broadcast %6 : vector<1x256xf32> to vector<16x256xf32>
    %8 = arith.addf %5, %7 : vector<16x256xf32>
    %cst_6 = arith.constant 5.000000e-01 : f32
    %9 = vector.broadcast %cst_6 : f32 to vector<16x256xf32>
    %10 = arith.mulf %8, %9 : vector<16x256xf32>
    %cst_7 = arith.constant 0.707106769 : f32
    %11 = vector.broadcast %cst_7 : f32 to vector<16x256xf32>
    %12 = arith.mulf %8, %11 : vector<16x256xf32>
    %13 = math.absf %12 : vector<16x256xf32>
    %cst_8 = arith.constant 0.327591091 : f32
    %14 = vector.broadcast %cst_8 : f32 to vector<16x256xf32>
    %15 = arith.mulf %14, %13 : vector<16x256xf32>
    %cst_9 = arith.constant 1.000000e+00 : f32
    %16 = vector.broadcast %cst_9 : f32 to vector<16x256xf32>
    %17 = arith.addf %16, %15 : vector<16x256xf32>
    %cst_10 = arith.constant 1.000000e+00 : f32
    %18 = vector.broadcast %cst_10 : f32 to vector<16x256xf32>
    %19 = arith.divf %18, %17 : vector<16x256xf32>
    %cst_11 = arith.constant 1.06140542 : f32
    %20 = vector.broadcast %cst_11 : f32 to vector<16x256xf32>
    %21 = arith.mulf %20, %19 : vector<16x256xf32>
    %cst_12 = arith.constant -1.45315206 : f32
    %22 = vector.broadcast %cst_12 : f32 to vector<16x256xf32>
    %23 = arith.addf %21, %22 : vector<16x256xf32>
    %24 = arith.mulf %23, %19 : vector<16x256xf32>
    %cst_13 = arith.constant 1.42141378 : f32
    %25 = vector.broadcast %cst_13 : f32 to vector<16x256xf32>
    %26 = arith.addf %24, %25 : vector<16x256xf32>
    %27 = arith.mulf %26, %19 : vector<16x256xf32>
    %cst_14 = arith.constant -0.284496725 : f32
    %28 = vector.broadcast %cst_14 : f32 to vector<16x256xf32>
    %29 = arith.addf %27, %28 : vector<16x256xf32>
    %30 = arith.mulf %29, %19 : vector<16x256xf32>
    %cst_15 = arith.constant 0.254829586 : f32
    %31 = vector.broadcast %cst_15 : f32 to vector<16x256xf32>
    %32 = arith.addf %30, %31 : vector<16x256xf32>
    %33 = arith.mulf %32, %19 : vector<16x256xf32>
    %cst_16 = arith.constant 0.000000e+00 : f32
    %34 = vector.broadcast %cst_16 : f32 to vector<16x256xf32>
    %35 = arith.subf %34, %13 : vector<16x256xf32>
    %36 = arith.mulf %35, %13 : vector<16x256xf32>
    %37 = math.exp %36 : vector<16x256xf32>
    %38 = arith.mulf %33, %37 : vector<16x256xf32>
    %cst_17 = arith.constant 1.000000e+00 : f32
    %39 = vector.broadcast %cst_17 : f32 to vector<16x256xf32>
    %40 = arith.subf %39, %38 : vector<16x256xf32>
    %cst_18 = arith.constant 0.000000e+00 : f32
    %41 = vector.broadcast %cst_18 : f32 to vector<16x256xf32>
    %42 = arith.cmpf olt, %12, %41 : vector<16x256xf32>
    %cst_19 = arith.constant 0.000000e+00 : f32
    %43 = vector.broadcast %cst_19 : f32 to vector<16x256xf32>
    %44 = arith.subf %43, %40 : vector<16x256xf32>
    %45 = arith.select %42, %44, %40 : vector<16x256xi1>, vector<16x256xf32>
    %cst_20 = arith.constant 1.000000e+00 : f32
    %46 = vector.broadcast %cst_20 : f32 to vector<16x256xf32>
    %47 = arith.addf %46, %45 : vector<16x256xf32>
    %48 = arith.mulf %10, %47 : vector<16x256xf32>
    %c0_21 = arith.constant 0 : index
    %c0_22 = arith.constant 0 : index
    %49 = vector.load %arg10[%c0_21, %c0_22] : memref<16x32xf32, #tpu.memory_space<vmem>>, vector<16x32xf32>
    %c0_23 = arith.constant 0 : index
    %c0_24 = arith.constant 0 : index
    %50 = vector.load %arg5[%c0_23, %c0_24] : memref<256x32xf32, #tpu.memory_space<vmem>>, vector<256x32xf32>
    %cst_25 = arith.constant dense<0.000000e+00> : vector<16x32xf32>
    %51 = tpu.matmul %48, %50, %cst_25 {dimension_numbers = #tpu.dot_dimension_numbers<[1], [0], [0], [1], [0, 0, 1, 1], [], []>} : vector<16x256xf32>, vector<256x32xf32>, vector<16x32xf32> -> vector<16x32xf32>
    %52 = arith.addf %49, %51 : vector<16x32xf32>
    %c0_26 = arith.constant 0 : index
    %c0_27 = arith.constant 0 : index
    %53 = vector.load %arg10[%c0_26, %c0_27] : memref<16x32xf32, #tpu.memory_space<vmem>>, vector<16x32xf32>
    tpu.vector_store %arg10[%c0_26, %c0_27], %52 {strides = array<i32>} : memref<16x32xf32, #tpu.memory_space<vmem>>, vector<16x32xf32>,
    %c0_i32_28 = arith.constant 0 : i32
    %54 = arith.cmpi eq, %arg1, %c0_i32_28 : i32
    %55 = arith.extui %54 : i1 to i32
    %c0_i32_29 = arith.constant 0 : i32
    %56 = arith.cmpi ne, %55, %c0_i32_29 : i32
    scf.if %56 {
      %c0_30 = arith.constant 0 : index
      %c0_31 = arith.constant 0 : index
      %57 = vector.load %arg10[%c0_30, %c0_31] : memref<16x32xf32, #tpu.memory_space<vmem>>, vector<16x32xf32>
      %c0_32 = arith.constant 0 : index
      %c0_33 = arith.constant 0 : index
      %58 = vector.load %arg6[%c0_32, %c0_33] : memref<1x32xf32, #tpu.memory_space<vmem>>, vector<1x32xf32>
      %59 = vector.broadcast %58 : vector<1x32xf32> to vector<16x32xf32>
      %60 = arith.addf %57, %59 : vector<16x32xf32>
      %c0_34 = arith.constant 0 : index
      %c0_35 = arith.constant 0 : index
      %61 = vector.load %arg2[%c0_34, %c0_35] : memref<16x32xf32, #tpu.memory_space<vmem>>, vector<16x32xf32>
      %62 = arith.addf %60, %61 : vector<16x32xf32>
      %cst_36 = arith.constant dense<0.000000e+00> : vector<16xf32>
      %63 = vector.multi_reduction <add>, %62, %cst_36 [1] : vector<16x32xf32> to vector<16xf32>
      %64 = vector.shape_cast %63 : vector<16xf32> to vector<16x1xf32>
      %cst_37 = arith.constant 3.200000e+01 : f32
      %65 = vector.broadcast %cst_37 : f32 to vector<16x1xf32>
      %66 = arith.divf %64, %65 : vector<16x1xf32>
      %67 = vector.broadcast %66 : vector<16x1xf32> to vector<16x32xf32>
      %68 = arith.subf %62, %67 : vector<16x32xf32>
      %69 = arith.mulf %68, %68 : vector<16x32xf32>
      %cst_38 = arith.constant dense<0.000000e+00> : vector<16xf32>
      %70 = vector.multi_reduction <add>, %69, %cst_38 [1] : vector<16x32xf32> to vector<16xf32>
      %71 = vector.shape_cast %70 : vector<16xf32> to vector<16x1xf32>
      %cst_39 = arith.constant 3.200000e+01 : f32
      %72 = vector.broadcast %cst_39 : f32 to vector<16x1xf32>
      %73 = arith.divf %71, %72 : vector<16x1xf32>
      %cst_40 = arith.constant 9.99999996E-13 : f32
      %74 = vector.broadcast %cst_40 : f32 to vector<16x1xf32>
      %75 = arith.addf %73, %74 : vector<16x1xf32>
      %76 = math.rsqrt %75 : vector<16x1xf32>
      %c0_41 = arith.constant 0 : index
      %c0_42 = arith.constant 0 : index
      %77 = vector.load %arg7[%c0_41, %c0_42] : memref<1x32xf32, #tpu.memory_space<vmem>>, vector<1x32xf32>
      %78 = vector.broadcast %76 : vector<16x1xf32> to vector<16x32xf32>
      %79 = arith.mulf %68, %78 : vector<16x32xf32>
      %80 = vector.broadcast %77 : vector<1x32xf32> to vector<16x32xf32>
      %81 = arith.mulf %80, %79 : vector<16x32xf32>
      %c0_43 = arith.constant 0 : index
      %c0_44 = arith.constant 0 : index
      %82 = vector.load %arg8[%c0_43, %c0_44] : memref<1x32xf32, #tpu.memory_space<vmem>>, vector<1x32xf32>
      %83 = vector.broadcast %82 : vector<1x32xf32> to vector<16x32xf32>
      %84 = arith.addf %81, %83 : vector<16x32xf32>
      %c0_45 = arith.constant 0 : index
      %c0_46 = arith.constant 0 : index
      %85 = vector.load %arg9[%c0_45, %c0_46] : memref<16x32xf32, #tpu.memory_space<vmem>>, vector<16x32xf32>
      tpu.vector_store %arg9[%c0_45, %c0_46], %84 {strides = array<i32>} : memref<16x32xf32, #tpu.memory_space<vmem>>, vector<16x32xf32>,
    } else {
    }
    return
  }
  func.func @transform_0(%arg0: i32, %arg1: i32) -> (i32, i32) {
    %c0_i32 = arith.constant 0 : i32
    %c0_i32_0 = arith.constant 0 : i32
    return %arg0, %c0_i32 : i32, i32
  }
  func.func @transform_1(%arg0: i32, %arg1: i32) -> (i32, i32) {
    %c0_i32 = arith.constant 0 : i32
    %c0_i32_0 = arith.constant 0 : i32
    return %c0_i32, %arg1 : i32, i32
  }
  func.func @transform_2(%arg0: i32, %arg1: i32) -> (i32, i32) {
    %c0_i32 = arith.constant 0 : i32
    %c0_i32_0 = arith.constant 0 : i32
    return %c0_i32, %arg1 : i32, i32
  }
  func.func @transform_3(%arg0: i32, %arg1: i32) -> (i32, i32) {
    %c0_i32 = arith.constant 0 : i32
    %c0_i32_0 = arith.constant 0 : i32
    return %arg1, %c0_i32 : i32, i32
  }
  func.func @transform_4(%arg0: i32, %arg1: i32) -> (i32, i32) {
    %c0_i32 = arith.constant 0 : i32
    %c0_i32_0 = arith.constant 0 : i32
    %c0_i32_1 = arith.constant 0 : i32
    return %c0_i32, %c0_i32_0 : i32, i32
  }
  func.func @transform_5(%arg0: i32, %arg1: i32) -> (i32, i32) {
    %c0_i32 = arith.constant 0 : i32
    %c0_i32_0 = arith.constant 0 : i32
    %c0_i32_1 = arith.constant 0 : i32
    return %c0_i32, %c0_i32_0 : i32, i32
  }
  func.func @transform_6(%arg0: i32, %arg1: i32) -> (i32, i32) {
    %c0_i32 = arith.constant 0 : i32
    %c0_i32_0 = arith.constant 0 : i32
    %c0_i32_1 = arith.constant 0 : i32
    return %c0_i32, %c0_i32_0 : i32, i32
  }
  func.func @transform_7(%arg0: i32, %arg1: i32) -> (i32, i32) {
    %c0_i32 = arith.constant 0 : i32
    %c0_i32_0 = arith.constant 0 : i32
    return %arg0, %c0_i32 : i32, i32
  }
}

</mosaic_0001>

<bundles_post_ra>
// kernel: tpu_custom_call.1
= control target key start
LH: loop header
LB: loop body
LE: loop exit
PB: predicated region body
PF: predicated region fallthrough
CT: control target
= control target key end

     0   :  { %s797_s0 = inlined_call_operand.vmem [shape: f32[16,32], index: 0, kind: input, shape index: {}]   ;;  %s798_s1 = inlined_call_operand.vmem [shape: f32[32,256], index: 1, kind: input, shape index: {}]   ;;  %s799_s2 = inlined_call_operand.vmem [shape: f32[1,256], index: 2, kind: input, shape index: {}]   ;;  %s800_s3 = inlined_call_operand.vmem [shape: f32[256,32], index: 3, kind: input, shape index: {}]   ;;  %s801_s4 = inlined_call_operand.vmem [shape: f32[1,32], index: 4, kind: input, shape index: {}]   ;;  %s802_s5 = inlined_call_operand.vmem [shape: f32[1,32], index: 5, kind: input, shape index: {}]   ;;  %s803_s6 = inlined_call_operand.vmem [shape: f32[1,32], index: 6, kind: input, shape index: {}]   ;;  %s804_s7 = inlined_call_operand.hbm [shape: f32[16,32], index: 7, kind: output, shape index: {}]  }
   0x1   :  { %v42_v0 = vld [vmem:[%s798_s1 + $0x30] sm:$0xff]  ;;  %v43_v1 = vld [vmem:[%s798_s1 + $0x38] sm:$0xff]  ;;  %v40_v2 = vld [vmem:[%s798_s1 + $0x20] sm:$0xff] }
   0x2   :  { %69 = vmatpush.msra.mxu0 %v42_v0  ;;  %92 = vmatpush.msra.mxu1 %v43_v1  ;;  %v41_v3 = vld [vmem:[%s798_s1 + $0x28] sm:$0xff]  ;;  %v38_v4 = vld [vmem:[%s798_s1 + $0x10] sm:$0xff]  ;;  %v39_v5 = vld [vmem:[%s798_s1 + $0x18] sm:$0xff] }
   0x3   :  { %v36_v6 = vld [vmem:[%s798_s1] sm:$0xff]  ;;  %v37_v7 = vld [vmem:[%s798_s1 + $0x8] sm:$0xff] }
   0x4   :  { %70 = vmatpush.msra.mxu0 %v40_v2  ;;  %93 = vmatpush.msra.mxu1 %v41_v3 }
   0x5   :  { %12 = vsyncpa [#allocation4], 0  ;;  %vm31_vm0 = vcmask 261120   ;;  %v577_v8 = vld [vmem:[%s797_s0] sm:$0xff]  ;;  %v586_v9 = vld [vmem:[%s797_s0 + $0x8] sm:$0xff]  ;;  %s433_s16 = sshll.u32 %s804_s7, 4  ;;  %s434_s16 = int_to_ptr.hbm [resolvable:$true] %s433_s16 }
   0x6   :  { %71 = vmatpush.msra.mxu0 %v38_v4  ;;  %94 = vmatpush.msra.mxu1 %v39_v5  ;;  %v44_v10 = vld [vmem:[%s799_s2] sm:$0x3]  ;;  %v280_v11 = vld [vmem:[%s800_s3 + $0x78] sm:$0xff]  ;;  %v279_v15 = vld [vmem:[%s800_s3 + $0x70] sm:$0xff]  ;;  %s509_s17 = smov 8  }
   0x7   :  { %v296_v12 = vld [vmem:[%s800_s3 + $0xf8] sm:$0xff]  ;;  %297 = vmatpush.msra.mxu2 %v280_v11  ;;  %v46_v13 = vperm.slane %v44_v10, 0  ;;  %v47_v14 = vperm.slane %v44_v10, 1  ;;  %v295_v16 = vld [vmem:[%s800_s3 + $0xf0] sm:$0xff]  ;;  %v278_v17 = vld [vmem:[%s800_s3 + $0x68] sm:$0xff] }
   0x8   :  { %72 = vmatpush.msra.mxu0 %v36_v6  ;;  %95 = vmatpush.msra.mxu1 %v37_v7  ;;  %v294_v18 = vld [vmem:[%s800_s3 + $0xe8] sm:$0xff]  ;;  %v277_v21 = vld [vmem:[%s800_s3 + $0x60] sm:$0xff]  ;;  %v276_v25 = vld [vmem:[%s800_s3 + $0x58] sm:$0xff] }
   0x9   :  { %445 = vmatmul.msk.f32.vlgmr.msra.gmra.mxu0 %vm31_vm0, %v577_v8  ;;  %447 = vmatmul.msk.f32.vlgmr.msra.gmra.mxu1 %vm31_vm0, %v577_v8  ;;  %v293_v22 = vld [vmem:[%s800_s3 + $0xe0] sm:$0xff]  ;;  %v292_v26 = vld [vmem:[%s800_s3 + $0xd8] sm:$0xff]  ;;  %v275_v29 = vld [vmem:[%s800_s3 + $0x50] sm:$0xff] }
   0xa   :  { %320 = vmatpush.msra.mxu3 %v296_v12  ;;  %298 = vmatpush.msra.mxu2 %v279_v15  ;;  %v291_v30 = vld [vmem:[%s800_s3 + $0xd0] sm:$0xff]  ;;  %v274_v33 = vld [vmem:[%s800_s3 + $0x48] sm:$0xff]  ;;  %v273_v37 = vld [vmem:[%s800_s3 + $0x40] sm:$0xff] }
   0xb   :  { %v290_v34 = vld [vmem:[%s800_s3 + $0xc8] sm:$0xff]  ;;  %v289_v38 = vld [vmem:[%s800_s3 + $0xc0] sm:$0xff]  ;;  %v272_v43 = vld [vmem:[%s800_s3 + $0x38] sm:$0xff] }
   0xc   :  { %321 = vmatpush.msra.mxu3 %v295_v16  ;;  %299 = vmatpush.msra.mxu2 %v278_v17  ;;  %v288_v44 = vld [vmem:[%s800_s3 + $0xb8] sm:$0xff]  ;;  %v271_v47 = vld [vmem:[%s800_s3 + $0x30] sm:$0xff]  ;;  %v270_v51 = vld [vmem:[%s800_s3 + $0x28] sm:$0xff] }
   0xd   :  { %v287_v48 = vld [vmem:[%s800_s3 + $0xb0] sm:$0xff]  ;;  %v286_v52 = vld [vmem:[%s800_s3 + $0xa8] sm:$0xff]  ;;  %v269_v55 = vld [vmem:[%s800_s3 + $0x20] sm:$0xff] }
   0xe   :  { %322 = vmatpush.msra.mxu3 %v294_v18  ;;  %300 = vmatpush.msra.mxu2 %v277_v21  ;;  %v285_v56 = vld [vmem:[%s800_s3 + $0xa0] sm:$0xff]  ;;  %v268_v60 = vld [vmem:[%s800_s3 + $0x18] sm:$0xff]  ;;  %v267_v3 = vld [vmem:[%s800_s3 + $0x10] sm:$0xff] }
   0xf   :  { %v284_v61 = vld [vmem:[%s800_s3 + $0x98] sm:$0xff]  ;;  %v283_v4 = vld [vmem:[%s800_s3 + $0x90] sm:$0xff]  ;;  %v266_v11 = vld [vmem:[%s800_s3 + $0x8] sm:$0xff] }
  0x10   :  { %323 = vmatpush.msra.mxu3 %v293_v22  ;;  %301 = vmatpush.msra.mxu2 %v276_v25  ;;  %v282_v12 = vld [vmem:[%s800_s3 + $0x88] sm:$0xff]  ;;  %v265_v18 = vld [vmem:[%s800_s3] sm:$0xff] }
  0x11   :  { %446 = vmatmul.msk.f32.gmra.mxu0 %vm31_vm0, %v586_v9  ;;  %448 = vmatmul.msk.f32.gmra.mxu1 %vm31_vm0, %v586_v9 }
  0x12   :  { %324 = vmatpush.msra.mxu3 %v292_v26  ;;  %302 = vmatpush.msra.mxu2 %v275_v29 }
  0x14   :  { %325 = vmatpush.msra.mxu3 %v291_v30  ;;  %303 = vmatpush.msra.mxu2 %v274_v33 }
  0x16   :  { %326 = vmatpush.msra.mxu3 %v290_v34  ;;  %304 = vmatpush.msra.mxu2 %v273_v37 }
  0x18   :  { %327 = vmatpush.msra.mxu3 %v289_v38  ;;  %305 = vmatpush.msra.mxu2 %v272_v43 }
  0x1a   :  { %328 = vmatpush.msra.mxu3 %v288_v44  ;;  %306 = vmatpush.msra.mxu2 %v271_v47 }
  0x1c   :  { %329 = vmatpush.msra.mxu3 %v287_v48  ;;  %307 = vmatpush.msra.mxu2 %v270_v51 }
  0x1e   :  { %330 = vmatpush.msra.mxu3 %v286_v52  ;;  %308 = vmatpush.msra.mxu2 %v269_v55 }
  0x20   :  { %331 = vmatpush.msra.mxu3 %v285_v56  ;;  %309 = vmatpush.msra.mxu2 %v268_v60 }
  0x22   :  { %332 = vmatpush.msra.mxu3 %v284_v61  ;;  %310 = vmatpush.msra.mxu2 %v267_v3 }
  0x24   :  { %333 = vmatpush.msra.mxu3 %v283_v4  ;;  %311 = vmatpush.msra.mxu2 %v266_v11 }
  0x26   :  { %334 = vmatpush.msra.mxu3 %v282_v12  ;;  %312 = vmatpush.msra.mxu2 %v265_v18 }
  0x86   :  { %v74_v19 = vpop.f32.mrf.mxu0  ;;  %v97_v20 = vpop.f32.mrf.mxu1 }
  0x87   :  { %v619_v23 = vadd.f32 %v74_v19, %v46_v13  ;;  %v621_v24 = vadd.f32 %v97_v20, %v47_v14  ;;  %v281_v19 = vld [vmem:[%s800_s3 + $0x80] sm:$0xff] }
  0x88   :  { %335 = vmatpush.msra.mxu3 %v281_v19 }
  0x89   :  { %v630_v27 = vmul.f32 0.70710677, %v619_v23  ;;  %v633_v28 = vmul.f32 0.70710677, %v621_v24 }
  0x8b   :  { %v642_v31 = vand.u32 2147483647, %v630_v27  ;;  %v645_v32 = vand.u32 2147483647, %v633_v28 }
  0x8d   :  { %v115_v35 = vmul.f32 0.3275911, %v642_v31  ;;  %v116_v36 = vmul.f32 0.3275911, %v645_v32  ;;  %v219_v6 = vsub.f32 0.0, %v642_v31  ;;  %v220_v10 = vsub.f32 0.0, %v645_v32 }
  0x8e   :  { %v77_v39 = vpop.f32.mrf.mxu0  ;;  %v100_v40 = vpop.f32.mrf.mxu1 }
  0x8f   :  { %v661_v41 = vadd.f32 1.0, %v115_v35  ;;  %v663_v42 = vadd.f32 1.0, %v116_v36  ;;  %v671_v45 = vadd.f32 %v77_v39, %v46_v13  ;;  %v673_v46 = vadd.f32 %v100_v40, %v47_v14 }
  0x90   :  { %v223_v21 = vmul.f32 %v219_v6, %v642_v31  ;;  %v224_v25 = vmul.f32 %v220_v10, %v645_v32 }
  0x91   :  { %457 = vrcp.f32 %v661_v41  ;;  %v684_v49 = vmul.f32 0.70710677, %v671_v45  ;;  %v687_v50 = vmul.f32 0.70710677, %v673_v46  ;;  %v134_v13 = vand.u32 2147483648, %v661_v41 }
  0x92   :  { %459 = vrcp.f32 %v663_v42  ;;  %v132_v15 = vand.u32 2147483647, %v661_v41  ;;  %v149_v16 = vand.u32 2147483648, %v663_v42  ;;  %v147_v20 = vand.u32 2147483647, %v663_v42 }
  0x93   :  { %v696_v53 = vand.u32 2147483647, %v684_v49  ;;  %v699_v54 = vand.u32 2147483647, %v687_v50  ;;  %vm128_vm3 = vweird.f32 %v661_v41  ;;  %vm143_vm4 = vweird.f32 %v663_v42 }
  0x94   :  { %v135_v26 = vor.u32 1.1754944e-38, %v134_v13  ;;  %vm133_vm6 = vcmp.eq.f32.partialorder %v132_v15, 8.507059e+37  ;;  %v150_v34 = vor.u32 1.1754944e-38, %v149_v16  ;;  %vm148_vm8 = vcmp.eq.f32.partialorder %v147_v20, 8.507059e+37 }
  0x95   :  { %v117_v57 = vmul.f32 0.3275911, %v696_v53  ;;  %v118_v59 = vmul.f32 0.3275911, %v699_v54  ;;  %v227_v38 = vmul.f32 1.442695, %v223_v21 }
  0x96   :  { %v221_v60 = vsub.f32 0.0, %v696_v53 }
  0x97   :  { %v458_v58 = vpop.eup %457  ;;  %v716_v0 = vadd.f32 1.0, %v117_v57  ;;  %v719_v2 = vadd.f32 1.0, %v118_v59 }
  0x98   :  { %v460_v62 = vpop.eup %459  ;;  %v124_v63 = vmul.f32 %v458_v58, %v661_v41  ;;  %vm129_vm1 = vweird.f32 %v458_v58  ;;  %v229_v41 = vmul.f32 1.442695, %v224_v25  ;;  %v225_v18 = vmul.f32 %v221_v60, %v696_v53 }
  0x99   :  { %v139_v1 = vmul.f32 %v460_v62, %v663_v42  ;;  %461 = vrcp.f32 %v716_v0  ;;  %vm144_vm2 = vweird.f32 %v460_v62  ;;  %vm130_vm5 = vmor %vm128_vm3, %vm129_vm1  ;;  %v162_v48 = vand.u32 2147483647, %v716_v0 }
  0x9a   :  { %v125_v5 = vsub.f32 1.0, %v124_v63  ;;  %463 = vrcp.f32 %v719_v2  ;;  %vm145_vm7 = vmor %vm143_vm4, %vm144_vm2  ;;  %v164_v51 = vand.u32 2147483648, %v716_v0  ;;  %v179_v56 = vand.u32 2147483648, %v719_v2 }
  0x9b   :  { %v140_v7 = vsub.f32 1.0, %v139_v1  ;;  %v177_v59 = vand.u32 2147483647, %v719_v2  ;;  %vm158_vm11 = vweird.f32 %v716_v0  ;;  %vm173_vm12 = vweird.f32 %v719_v2 }
  0x9c   :  { %v126_v14 = vmul.f32 %v458_v58, %v125_v5  ;;  %v165_v1 = vor.u32 1.1754944e-38, %v164_v51  ;;  %vm163_vm14 = vcmp.eq.f32.partialorder %v162_v48, 8.507059e+37  ;;  %v180_v6 = vor.u32 1.1754944e-38, %v179_v56 }
  0x9d   :  { %v141_v17 = vmul.f32 %v460_v62, %v140_v7  ;;  %vm178_vm1 = vcmp.eq.f32.partialorder %v177_v59, 8.507059e+37  ;;  %465 = vpow2.f32 %v227_v38  ;;  %vm243_vm2 = vcmp.lt.f32.partialorder %v630_v27, 0.0 }
  0x9e   :  { %v127_v22 = vadd.f32 %v458_v58, %v126_v14  ;;  %467 = vpow2.f32 %v229_v41  ;;  %vm244_vm3 = vcmp.lt.f32.partialorder %v633_v28, 0.0  ;;  %vm245_vm4 = vcmp.lt.f32.partialorder %v684_v49, 0.0 }
  0x9f   :  { %v142_v29 = vadd.f32 %v460_v62, %v141_v17  ;;  %v462_v30 = vpop.eup %461 }
  0xa0   :  { %v131_v33 = vsel %vm130_vm5, %v458_v58, %v127_v22  ;;  %v464_v31 = vpop.eup %463  ;;  %v154_v35 = vmul.f32 %v462_v30, %v716_v0  ;;  %vm159_vm9 = vweird.f32 %v462_v30  ;;  %v222_v0 = vsub.f32 0.0, %v699_v54 }
  0xa1   :  { %v136_v36 = vsel %vm133_vm6, %v135_v26, %v131_v33  ;;  %v146_v37 = vsel %vm145_vm7, %v460_v62, %v142_v29  ;;  %v169_v32 = vmul.f32 %v464_v31, %v719_v2  ;;  %vm174_vm10 = vweird.f32 %v464_v31  ;;  %vm160_vm13 = vmor %vm158_vm11, %vm159_vm9 }
  0xa2   :  { %v183_v39 = vmul.f32 1.0614054, %v136_v36  ;;  %v151_v40 = vsel %vm148_vm8, %v150_v34, %v146_v37  ;;  %v155_v42 = vsub.f32 1.0, %v154_v35  ;;  %vm175_vm15 = vmor %vm173_vm12, %vm174_vm10  ;;  %v226_v21 = vmul.f32 %v222_v0, %v699_v54 }
  0xa3   :  { %v184_v43 = vmul.f32 1.0614054, %v151_v40  ;;  %v170_v44 = vsub.f32 1.0, %v169_v32  ;;  %v231_v34 = vmul.f32 1.442695, %v225_v18  ;;  %v466_v37 = vpop.eup %465  ;;  %vm246_vm5 = vcmp.lt.f32.partialorder %v687_v50, 0.0 }
  0xa4   :  { %v187_v47 = vadd.f32 -1.4531521, %v183_v39  ;;  %v156_v52 = vmul.f32 %v462_v30, %v155_v42  ;;  %v233_v38 = vmul.f32 1.442695, %v226_v21  ;;  %v468_v41 = vpop.eup %467 }
  0xa5   :  { %v188_v55 = vadd.f32 -1.4531521, %v184_v43  ;;  %v171_v57 = vmul.f32 %v464_v31, %v170_v44  ;;  %469 = vpow2.f32 %v231_v34 }
  0xa6   :  { %v191_v58 = vmul.f32 %v187_v47, %v136_v36  ;;  %v157_v62 = vadd.f32 %v462_v30, %v156_v52  ;;  %471 = vpow2.f32 %v233_v38 }
  0xa7   :  { %v192_v61 = vmul.f32 %v188_v55, %v151_v40  ;;  %v172_v3 = vadd.f32 %v464_v31, %v171_v57 }
  0xa8   :  { %v195_v63 = vadd.f32 1.4214138, %v191_v58  ;;  %v161_v5 = vsel %vm160_vm13, %v462_v30, %v157_v62  ;;  %v103_v58 = vmul.f32 0.5, %v619_v23 }
  0xa9   :  { %v196_v4 = vadd.f32 1.4214138, %v192_v61  ;;  %v166_v10 = vsel %vm163_vm14, %v165_v1, %v161_v5  ;;  %v176_v11 = vsel %vm175_vm15, %v464_v31, %v172_v3 }
  0xaa   :  { %v199_v7 = vmul.f32 %v195_v63, %v136_v36  ;;  %v185_v13 = vmul.f32 1.0614054, %v166_v10  ;;  %v181_v14 = vsel %vm178_vm1, %v180_v6, %v176_v11  ;;  %v104_v63 = vmul.f32 0.5, %v621_v24 }
  0xab   :  { %v200_v12 = vmul.f32 %v196_v4, %v151_v40  ;;  %v186_v2 = vmul.f32 1.0614054, %v181_v14  ;;  %v470_v62 = vpop.eup %469  ;;  %v105_v24 = vmul.f32 0.5, %v671_v45 }
  0xac   :  { %v203_v15 = vadd.f32 -0.28449672, %v199_v7  ;;  %v189_v17 = vadd.f32 -1.4531521, %v185_v13  ;;  %v472_v4 = vpop.eup %471 }
  0xad   :  { %v204_v16 = vadd.f32 -0.28449672, %v200_v12  ;;  %v190_v20 = vadd.f32 -1.4531521, %v186_v2 }
  0xae   :  { %v207_v19 = vmul.f32 %v203_v15, %v136_v36  ;;  %v193_v25 = vmul.f32 %v189_v17, %v166_v10  ;;  %v505_v17 = vmov 0.0  }
  0xaf   :  { %v208_v22 = vmul.f32 %v204_v16, %v151_v40  ;;  %v194_v29 = vmul.f32 %v190_v20, %v181_v14  ;;  %32 = vst.msk [vmem:[#allocation2] sm:$0xff] %vm31_vm0, %v505_v17 }
  0xb0   :  { %v211_v26 = vadd.f32 0.2548296, %v207_v19  ;;  %v197_v33 = vadd.f32 1.4214138, %v193_v25  ;;  %33 = vst.msk [vmem:[#allocation2 + $0x8] sm:$0xff] %vm31_vm0, %v505_v17 }
  0xb1   :  { %v212_v30 = vadd.f32 0.2548296, %v208_v22  ;;  %v198_v35 = vadd.f32 1.4214138, %v194_v29  ;;  %v454_v22 = vld [vmem:[%s801_s4] ss:$0 sm:$0xff] }
  0xb2   :  { %v215_v31 = vmul.f32 %v211_v26, %v136_v36  ;;  %v201_v39 = vmul.f32 %v197_v33, %v166_v10 }
  0xb3   :  { %v216_v32 = vmul.f32 %v212_v30, %v151_v40  ;;  %v202_v53 = vmul.f32 %v198_v35, %v181_v14 }
  0xb4   :  { %v235_v42 = vmul.f32 %v466_v37, %v215_v31  ;;  %v205_v44 = vadd.f32 -0.28449672, %v201_v39 }
  0xb5   :  { %v236_v43 = vmul.f32 %v468_v41, %v216_v32  ;;  %v206_v47 = vadd.f32 -0.28449672, %v202_v53  ;;  %v506_v32 = vmov 32.0  }
  0xb6   :  { %v239_v54 = vsub.f32 1.0, %v235_v42  ;;  %v209_v51 = vmul.f32 %v205_v44, %v166_v10  ;;  %v263_v18 = vld [vmem:[#allocation2] sm:$0xff]  ;;  %473 = vrcp.f32 %v506_v32 }
  0xb7   :  { %v240_v48 = vsub.f32 1.0, %v236_v43  ;;  %v210_v55 = vmul.f32 %v206_v47, %v181_v14  ;;  %v264_v21 = vld [vmem:[#allocation2 + $0x8] sm:$0xff] }
  0xb8   :  { %v247_v52 = vsub.f32 0.0, %v239_v54  ;;  %v213_v56 = vadd.f32 0.2548296, %v209_v51 }
  0xb9   :  { %v248_v36 = vsub.f32 0.0, %v240_v48  ;;  %v214_v57 = vadd.f32 0.2548296, %v210_v55 }
  0xba   :  { %v251_v40 = vsel %vm243_vm2, %v247_v52, %v239_v54  ;;  %v217_v61 = vmul.f32 %v213_v56, %v166_v10 }
  0xbb   :  { %v255_v59 = vadd.f32 1.0, %v251_v40  ;;  %v252_v60 = vsel %vm244_vm3, %v248_v36, %v240_v48  ;;  %v218_v3 = vmul.f32 %v214_v57, %v181_v14  ;;  %v106_v14 = vmul.f32 0.5, %v673_v46 }
  0xbc   :  { %v256_v1 = vadd.f32 1.0, %v252_v60  ;;  %v237_v6 = vmul.f32 %v470_v62, %v217_v61  ;;  %v474_v39 = vpop.eup %473 }
  0xbd   :  { %v259_v5 = vmul.f32 %v255_v59, %v103_v58  ;;  %v238_v7 = vmul.f32 %v472_v4, %v218_v3  ;;  %v369_v41 = vmul.f32 32.0, %v474_v39  ;;  %vm373_vm6 = vweird.f32 %v474_v39 }
  0xbe   :  { %v260_v27 = vmul.f32 %v256_v1, %v104_v63  ;;  %v241_v11 = vsub.f32 1.0, %v237_v6 }
  0xbf   :  { %313 = vmatmul.f32.vlgmr.msra.gmra.mxu2 %v259_v5  ;;  %v242_v28 = vsub.f32 1.0, %v238_v7  ;;  %v370_v42 = vsub.f32 1.0, %v369_v41 }
  0xc0   :  { %336 = vmatmul.f32.vlgmr.msra.gmra.mxu3 %v260_v27  ;;  %v249_v0 = vsub.f32 0.0, %v241_v11  ;;  %v455_v27 = vld [vmem:[%s802_s5] ss:$0 sm:$0xff]  ;;  %s507_s5 = smov [#allocation3]  }
  0xc1   :  { %v250_v23 = vsub.f32 0.0, %v242_v28  ;;  %v371_v53 = vmul.f32 %v474_v39, %v370_v42  ;;  %s431_s13 = sshll.u32 %s507_s5, 4  ;;  %s432_s13 = int_to_ptr.vmem [resolvable:$true] %s431_s13 }
  0xc2   :  { %v253_v10 = vsel %vm245_vm4, %v249_v0, %v241_v11 }
  0xc3   :  { %v257_v12 = vadd.f32 1.0, %v253_v10  ;;  %v254_v13 = vsel %vm246_vm5, %v250_v23, %v242_v28  ;;  %v372_v43 = vadd.f32 %v474_v39, %v371_v53  ;;  %v456_v23 = vld [vmem:[%s803_s6] ss:$0 sm:$0xff]  ;;  %s508_s6 = smov 128  }
  0xc4   :  { %v258_v15 = vadd.f32 1.0, %v254_v13 }
  0xc5   :  { %v261_v2 = vmul.f32 %v257_v12, %v105_v24  ;;  %v374_v44 = vsel %vm373_vm6, %v474_v39, %v372_v43 }
  0xc6   :  { %v262_v16 = vmul.f32 %v258_v15, %v106_v14 }
  0xc7   :  { %316 = vmatmul.f32.gmra.mxu2 %v261_v2 }
  0xc8   :  { %339 = vmatmul.f32.gmra.mxu3 %v262_v16 }
 0x142   :  { %v314_v49 = vpop.f32.mrf.mxu2 }
 0x143   :  { %v337_v50 = vpop.f32.mrf.mxu3 }
 0x144   :  { %v338_v19 = vadd.f32 %v337_v50, %v314_v49 }
 0x146   :  { %v343_v20 = vadd.f32 %v338_v19, %v263_v18 }
 0x148   :  { %345 = vst.msk [vmem:[#allocation2] sm:$0xff] %vm31_vm0, %v343_v20 }
 0x14a   :  { %v317_v45 = vpop.f32.mrf.mxu2 }
 0x14b   :  { %v340_v46 = vpop.f32.mrf.mxu3 }
 0x14c   :  { %v341_v25 = vadd.f32 %v340_v46, %v317_v45 }
 0x14e   :  { %v344_v26 = vadd.f32 %v341_v25, %v264_v21 }
 0x14f   :  { %v350_v29 = vld [vmem:[#allocation2] sm:$0xff] }
 0x150   :  { %v356_v30 = vadd.f32 %v454_v22, %v350_v29  ;;  %346 = vst.msk [vmem:[#allocation2 + $0x8] sm:$0xff] %vm31_vm0, %v344_v26 }
 0x152   :  { %v360_v33 = vadd.f32 %v356_v30, %v577_v8 }
 0x154   :  { %v362_v34 = vsel %vm31_vm0, %v360_v33, 0.0 }
 0x155   :  { %363 = vadd.xlane.f32.xlu0 %v362_v34 }
 0x157   :  { %v351_v31 = vld [vmem:[#allocation2 + $0x8] sm:$0xff] }
 0x158   :  { %v357_v35 = vadd.f32 %v454_v22, %v351_v31 }
 0x15a   :  { %v361_v37 = vadd.f32 %v357_v35, %v586_v9 }
 0x15c   :  { %v365_v38 = vsel %vm31_vm0, %v361_v37, 0.0 }
 0x15d   :  { %366 = vadd.xlane.f32.xlu0 %v365_v38 }
 0x1c8   :  { %v364_v8 = vpop.xlane.xlu0 %363 }
 0x1c9   :  { %v375_v54 = vmul.f32 %v374_v44, %v364_v8 }
 0x1cb   :  { %v377_v47 = vsub.f32 %v360_v33, %v375_v54 }
 0x1cd   :  { %v379_v48 = vmul.f32 %v377_v47, %v377_v47 }
 0x1cf   :  { %v381_v51 = vsel %vm31_vm0, %v379_v48, 0.0 }
 0x1d0   :  { %382 = vadd.xlane.f32.xlu1 %v381_v51  ;;  %v367_v9 = vpop.xlane.xlu0 %366 }
 0x1d1   :  { %v376_v52 = vmul.f32 %v374_v44, %v367_v9 }
 0x1d3   :  { %v378_v55 = vsub.f32 %v361_v37, %v376_v52 }
 0x1d5   :  { %v380_v36 = vmul.f32 %v378_v55, %v378_v55 }
 0x1d7   :  { %v384_v56 = vsel %vm31_vm0, %v380_v36, 0.0 }
 0x1d8   :  { %385 = vadd.xlane.f32.xlu1 %v384_v56 }
 0x243   :  { %v383_v40 = vpop.xlane.xlu1 %382 }
 0x244   :  { %v387_v57 = vmul.f32 %v383_v40, %v374_v44 }
 0x246   :  { %v389_v58 = vadd.f32 1e-12, %v387_v57 }
 0x248   :  { %475 = vrsqrt.f32 %v389_v58  ;;  %vm397_vm8 = vweird.f32 %v389_v58 }
 0x24b   :  { %v386_v59 = vpop.xlane.xlu1 %385 }
 0x24c   :  { %v388_v60 = vmul.f32 %v386_v59, %v374_v44 }
 0x24e   :  { %v476_v61 = vpop.eup %475  ;;  %v390_v63 = vadd.f32 1e-12, %v388_v60 }
 0x24f   :  { %v392_v62 = vmul.f32 %v476_v61, %v389_v58  ;;  %vm398_vm7 = vweird.f32 %v476_v61 }
 0x250   :  { %477 = vrsqrt.f32 %v390_v63  ;;  %vm399_vm9 = vmor %vm397_vm8, %vm398_vm7  ;;  %vm407_vm11 = vweird.f32 %v390_v63 }
 0x251   :  { %v393_v1 = vmul.f32 %v476_v61, %v392_v62 }
 0x253   :  { %v394_v3 = vmul.f32 0.5, %v393_v1 }
 0x255   :  { %v395_v4 = vsub.f32 1.5, %v394_v3 }
 0x256   :  { %v478_v5 = vpop.eup %477 }
 0x257   :  { %v396_v6 = vmul.f32 %v476_v61, %v395_v4  ;;  %v402_v7 = vmul.f32 %v478_v5, %v390_v63  ;;  %vm408_vm10 = vweird.f32 %v478_v5 }
 0x258   :  { %vm409_vm12 = vmor %vm407_vm11, %vm408_vm10 }
 0x259   :  { %v400_v11 = vsel %vm399_vm9, %v476_v61, %v396_v6  ;;  %v403_v0 = vmul.f32 %v478_v5, %v402_v7 }
 0x25a   :  { %v412_v28 = vmul.f32 %v400_v11, %v377_v47 }
 0x25b   :  { %v404_v24 = vmul.f32 0.5, %v403_v0 }
 0x25c   :  { %v417_v10 = vmul.f32 %v455_v27, %v412_v28 }
 0x25d   :  { %v405_v12 = vsub.f32 1.5, %v404_v24 }
 0x25e   :  { %v423_v13 = vadd.f32 %v456_v23, %v417_v10 }
 0x25f   :  { %v406_v14 = vmul.f32 %v478_v5, %v405_v12 }
 0x260   :  { %425 = vst.msk [vmem:[#allocation3] sm:$0xff] %vm31_vm0, %v423_v13 }
 0x261   :  { %v410_v15 = vsel %vm409_vm12, %v478_v5, %v406_v14 }
 0x262   :  { %v413_v2 = vmul.f32 %v410_v15, %v378_v55 }
 0x264   :  { %v418_v16 = vmul.f32 %v455_v27, %v413_v2 }
 0x266   :  { %v424_v17 = vadd.f32 %v456_v23, %v418_v16 }
 0x268   :  { %426 = vst.msk [vmem:[#allocation3 + $0x8] sm:$0xff] %vm31_vm0, %v424_v17 }
 0x269   :  { %439 = dma.vmem_to_hbm [thread:$0]  %s432_s13, 256, %s434_s16, [#allocation4], %s508_s6, %s508_s6, %s509_s17  }
 0x26a   :  { %503 = dma.done.wait [#allocation4], 256  }
 0x26b   :  { %504 = vsyncadd [#allocation4], 4294967040 }
 0x26c   :  { %444 = vsyncpa [#allocation4], 1 }

</bundles_post_ra>
